<compile_context>
chip_gen: v7x
topology: tpu7x:2x2x1
jax: 0.10.0
libtpu: 0.0.40
codegen_flags: <defaults>
</compile_context>

<pallas_src>
import functools

import jax
import jax.numpy as jnp
from jax.experimental import pallas as pl
from jax.experimental.pallas import tpu as pltpu

BN_EPS = 1e-5  # PyTorch BatchNorm2d default

TN = 128   # Cout tile (lane-dense; sized for the 128-wide MXU, good on v5e too)
TK = 128   # K (reduction) tile


def _round_up(x, m):
    return (x + m - 1) // m * m


# ---------------------------------------------------------------------------
# Pallas kernel: tiled matmul + (optional fused 1x1-downsample matmul)
#                + bias + (optional residual add) + (optional ReLU)
# Grid = (rows/TM, Coutp/TN, Kpad/TK); f32 accumulator in VMEM scratch.
# ---------------------------------------------------------------------------
def _make_fused_matmul_kernel(fuse_ds, fuse_res, relu):
    def kernel(*refs):
        it = iter(refs)
        p_ref = next(it)          # (TM, TK)   bf16 im2col patch tile
        w_ref = next(it)          # (TK, TN)   bf16 weight tile (BN scale folded)
        b_ref = next(it)          # (1,  TN)   f32 bias (BN bias, + downsample BN bias)
        pd_ref = wd_ref = r_ref = None
        if fuse_ds:
            pd_ref = next(it)     # (TM, Kd)   bf16 stride-2 sampled input tile
            wd_ref = next(it)     # (Kd, TN)   bf16 1x1 downsample weight
        if fuse_res:
            r_ref = next(it)      # (TM, TN)   f32 identity-shortcut tile
        o_ref = next(it)          # (TM, TN)   f32 output tile
        acc_ref = next(it)        # (TM, TN)   f32 scratch accumulator

        k = pl.program_id(2)

        @pl.when(k == 0)
        def _():
            acc_ref[...] = jnp.zeros_like(acc_ref)

        acc_ref[...] += jnp.dot(p_ref[...], w_ref[...],
                                preferred_element_type=jnp.float32)

        if fuse_ds:
            # Fused 1x1 stride-2 downsample path: single K tile, do it at k == 0.
            @pl.when(k == 0)
            def _():
                acc_ref[...] += jnp.dot(pd_ref[...], wd_ref[...],
                                        preferred_element_type=jnp.float32)

        @pl.when(k == pl.num_programs(2) - 1)
        def _():
            y = acc_ref[...] + b_ref[...]
            if fuse_res:
                y = y + r_ref[...]
            if relu:
                y = jnp.maximum(y, 0.0)
            o_ref[...] = y.astype(o_ref.dtype)

    return kernel


def fused_matmul(patch, w, bias, *, relu, ds=None, res=None):
    """(rows,K) @ (Kpad,Coutp) + bias [+ ds-matmul] [+ res] [+ ReLU] -> (rows_pad, Coutp) f32."""
    rows, K = patch.shape
    Kpad, Coutp = w.shape
    assert Coutp % TN == 0 and Kpad % TK == 0

    TM = 256 if rows >= 256 else 128
    rows_pad = _round_up(rows, TM)

    p = jnp.pad(patch, ((0, rows_pad - rows), (0, Kpad - K))).astype(jnp.bfloat16)

    inputs = [p, w, bias]
    in_specs = [
        pl.BlockSpec((TM, TK), lambda i, j, k: (i, k)),
        pl.BlockSpec((TK, TN), lambda i, j, k: (k, j)),
        pl.BlockSpec((1, TN), lambda i, j, k: (0, j)),
    ]

    fuse_ds = ds is not None
    fuse_res = res is not None
    if fuse_ds:
        pd, wd = ds
        kd = pd.shape[1]
        kd_pad = wd.shape[0]
        pdp = jnp.pad(pd, ((0, rows_pad - rows), (0, kd_pad - kd))).astype(jnp.bfloat16)
        inputs += [pdp, wd]
        in_specs += [
            pl.BlockSpec((TM, kd_pad), lambda i, j, k: (i, 0)),
            pl.BlockSpec((kd_pad, TN), lambda i, j, k: (0, j)),
        ]
    if fuse_res:
        cr = res.shape[1]
        rp = jnp.pad(res, ((0, rows_pad - rows), (0, Coutp - cr))).astype(jnp.float32)
        inputs.append(rp)
        in_specs.append(pl.BlockSpec((TM, TN), lambda i, j, k: (i, j)))

    kernel = _make_fused_matmul_kernel(fuse_ds, fuse_res, relu)

    return pl.pallas_call(
        kernel,
        out_shape=jax.ShapeDtypeStruct((rows_pad, Coutp), jnp.float32),
        grid_spec=pltpu.PrefetchScalarGridSpec(
            num_scalar_prefetch=0,
            grid=(rows_pad // TM, Coutp // TN, Kpad // TK),
            in_specs=in_specs,
            out_specs=pl.BlockSpec((TM, TN), lambda i, j, k: (i, j)),
            scratch_shapes=[pltpu.VMEM((TM, TN), jnp.float32)],
        ),
        compiler_params=pltpu.CompilerParams(
            dimension_semantics=("parallel", "parallel", "arbitrary"),
            # Tiles (<1 MiB total incl. double buffers) sized to fit v7x's
            # 64 MiB VMEM with large headroom; explicit limit for portability.
            vmem_limit_bytes=32 * 1024 * 1024,
        ),
    )(*inputs)


# ---------------------------------------------------------------------------
# Wrapper-side im2col (NHWC): (N,H,W,C) -> (N*Ho*Wo, KH*KW*C)
# Column order matches weight layout (kh, kw, cin) below.
# ---------------------------------------------------------------------------
def _im2col(x_nhwc, KH, KW, stride, padding):
    N, H, W, C = x_nhwc.shape
    Ho = (H + 2 * padding - KH) // stride + 1
    Wo = (W + 2 * padding - KW) // stride + 1
    xp = jnp.pad(x_nhwc, ((0, 0), (padding, padding), (padding, padding), (0, 0)))
    cols = []
    for kh in range(KH):
        for kw in range(KW):
            patch = xp[:, kh:kh + (Ho - 1) * stride + 1:stride,
                          kw:kw + (Wo - 1) * stride + 1:stride, :]
            cols.append(patch.reshape(N * Ho * Wo, C))
    return jnp.concatenate(cols, axis=-1), (Ho, Wo)


# ---------------------------------------------------------------------------
# Parameter setup (deterministic, matching the PyTorch module's shapes)
# ---------------------------------------------------------------------------
def init_cbasicblock_params(key, inplanes, outplanes):
    stride = outplanes // inplanes
    downsample = stride == 2
    keys = jax.random.split(key, 6)

    def conv_w(k, cout, cin, kh, kw):
        return 0.1 * jax.random.normal(k, (cout, cin, kh, kw), jnp.float32)

    def bn(k):
        k1, k2, k3, k4 = jax.random.split(k, 4)
        gamma = 1.0 + 0.1 * jax.random.normal(k1, (outplanes,), jnp.float32)
        beta = 0.1 * jax.random.normal(k2, (outplanes,), jnp.float32)
        mean = 0.1 * jax.random.normal(k3, (outplanes,), jnp.float32)
        var = 1.0 + 0.1 * jnp.abs(jax.random.normal(k4, (outplanes,), jnp.float32))
        return gamma, beta, mean, var

    params = {
        'stride': stride,
        'w1': conv_w(keys[0], outplanes, inplanes, 3, 3),   # conv1.weight (OIHW)
        'bn1': bn(keys[1]),
        'w2': conv_w(keys[2], outplanes, outplanes, 3, 3),  # conv2.weight (OIHW)
        'bn2': bn(keys[3]),
    }
    if downsample:
        params['wd'] = conv_w(keys[4], outplanes, inplanes, 1, 1)  # downsample.0.weight
        params['bnd'] = bn(keys[5])
    return params


def prepare_cbasicblock(params):
    """Fold BN into weights, reshape to (K, Cout) matmul layout, pad lane-dense,
    cast to bf16. Done ONCE per model, not per forward."""
    stride = params['stride']
    cout, cin = params['w1'].shape[0], params['w1'].shape[1]
    coutp = _round_up(cout, 128)

    def fold_to_matrix(w_oihw, bnp):
        gamma, beta, mean, var = bnp
        scale = gamma / jnp.sqrt(var + BN_EPS)
        bias = beta - mean * scale
        O, I, KH, KW = w_oihw.shape
        wm = jnp.transpose(w_oihw, (2, 3, 1, 0)).reshape(KH * KW * I, O)
        return wm * scale[None, :], bias          # BN scale folded into weights

    def pad_w(wm):
        K, O = wm.shape
        return jnp.pad(wm, ((0, _round_up(K, 128) - K),
                            (0, coutp - O))).astype(jnp.bfloat16)

    def pad_b(b):
        return jnp.pad(b, (0, coutp - b.shape[0])).reshape(1, coutp).astype(jnp.float32)

    w1m, b1 = fold_to_matrix(params['w1'], params['bn1'])
    w2m, b2 = fold_to_matrix(params['w2'], params['bn2'])
    prep = {'stride': stride, 'cin': cin, 'cout': cout,
            'w1': pad_w(w1m), 'b1': pad_b(b1), 'w2': pad_w(w2m)}
    if stride == 2:
        wdm, bd = fold_to_matrix(params['wd'], params['bnd'])
        prep['wd'] = pad_w(wdm)
        prep['b2'] = pad_b(b2 + bd)   # conv2 + downsample BN biases merged
    else:
        prep['b2'] = pad_b(b2)
    return prep


# ---------------------------------------------------------------------------
# CBasicBlock forward (Pallas) — NHWC end-to-end, two pallas_calls per block.
# ---------------------------------------------------------------------------
def cbasicblock_forward_nhwc(x, prep):
    N, H, W, Cin = x.shape
    stride = prep['stride']
    cout = prep['cout']

    # conv1 (3x3, stride s) + folded bn1 + ReLU
    p1, (Ho, Wo) = _im2col(x, 3, 3, stride, 1)
    h = fused_matmul(p1, prep['w1'], prep['b1'], relu=True)
    h = h[:N * Ho * Wo, :cout].reshape(N, Ho, Wo, cout)

    # conv2 (3x3, stride 1) + folded bn2 + shortcut + ReLU — one fused kernel
    p2, _ = _im2col(h, 3, 3, 1, 1)
    if stride == 2:
        # Fused 1x1/stride-2 downsample: output pixel (ho, wo) reads x[2ho, 2wo]
        xd = x[:, ::2, ::2, :].reshape(N * Ho * Wo, Cin)
        out = fused_matmul(p2, prep['w2'], prep['b2'], relu=True,
                           ds=(xd, prep['wd']))
    else:
        res = x.reshape(N * H * W, Cin)   # identity shortcut (Cin == Cout)
        out = fused_matmul(p2, prep['w2'], prep['b2'], relu=True, res=res)
    return out[:N * Ho * Wo, :cout].reshape(N, Ho, Wo, cout)


def cbasicblock_forward_pallas(x_nchw, prep):
    """NCHW convenience wrapper (PyTorch boundary). Prefer the NHWC entry when
    chaining blocks to avoid per-block transposes."""
    x = jnp.transpose(x_nchw, (0, 2, 3, 1))
    out = cbasicblock_forward_nhwc(x, prep)
    return jnp.transpose(out, (0, 3, 1, 2))


# ---------------------------------------------------------------------------
# Pure-JAX reference (NCHW, PyTorch semantics) for validation
# ---------------------------------------------------------------------------
def cbasicblock_forward_ref(x, params):
    def conv_bn(x, w, bnp, stride, padding, relu):
        y = jax.lax.conv_general_dilated(
            x, w, (stride, stride), [(padding, padding)] * 2,
            dimension_numbers=('NCHW', 'OIHW', 'NCHW'),
            precision=jax.lax.Precision.HIGHEST)
        gamma, beta, mean, var = bnp
        scale = gamma / jnp.sqrt(var + BN_EPS)
        bias = beta - mean * scale
        y = y * scale[None, :, None, None] + bias[None, :, None, None]
        if relu:
            y = jnp.maximum(y, 0.0)
        return y

    stride = params['stride']
    h = conv_bn(x, params['w1'], params['bn1'], stride, 1, True)
    h = conv_bn(h, params['w2'], params['bn2'], 1, 1, False)
    shortcut = x
    if 'wd' in params:
        shortcut = conv_bn(x, params['wd'], params['bnd'], 2, 0, False)
    return jnp.maximum(h + shortcut, 0.0)


if __name__ == "__main__":
    key = jax.random.PRNGKey(0)
    kx1, kx2, kp1, kp2 = jax.random.split(key, 4)

    # bf16 MXU inputs => bf16-aware tolerance
    ATOL = RTOL = 6e-2

    # Case 1: inplanes=4 -> outplanes=8 (stride 2, fused downsample path)
    x1 = jax.random.normal(kx1, (2, 4, 16, 16), jnp.float32)       # NCHW
    params1 = init_cbasicblock_params(kp1, 4, 8)
    prep1 = prepare_cbasicblock(params1)
    fwd1 = jax.jit(lambda xx: cbasicblock_forward_pallas(xx, prep1))
    out1 = jax.block_until_ready(fwd1(x1))
    ref1 = jax.block_until_ready(cbasicblock_forward_ref(x1, params1))
    assert out1.shape == (2, 8, 8, 8), out1.shape
    err1 = float(jnp.max(jnp.abs(out1 - ref1)))
    assert jnp.allclose(out1, ref1, atol=ATOL, rtol=RTOL), err1

    # Case 2: inplanes=8 -> outplanes=8 (stride 1, identity shortcut path)
    x2 = jax.random.normal(kx2, (2, 8, 16, 16), jnp.float32)       # NCHW
    params2 = init_cbasicblock_params(kp2, 8, 8)
    prep2 = prepare_cbasicblock(params2)
    fwd2 = jax.jit(lambda xx: cbasicblock_forward_pallas(xx, prep2))
    out2 = jax.block_until_ready(fwd2(x2))
    ref2 = jax.block_until_ready(cbasicblock_forward_ref(x2, params2))
    assert out2.shape == (2, 8, 16, 16), out2.shape
    err2 = float(jnp.max(jnp.abs(out2 - ref2)))
    assert jnp.allclose(out2, ref2, atol=ATOL, rtol=RTOL), err2

    print("KERNEL_OK")
</pallas_src>

<mosaic_0001>
module attributes {stable_mosaic.version = 11 : i64} {
  func.func @kernel(%arg0: i32, %arg1: i32, %arg2: i32, %arg3: memref<128x128xbf16, #tpu.memory_space<vmem>>, %arg4: memref<128x128xbf16, #tpu.memory_space<vmem>>, %arg5: memref<1x128xf32, #tpu.memory_space<vmem>>, %arg6: memref<128x128xf32, #tpu.memory_space<vmem>>, %arg7: memref<128x128xf32, #tpu.memory_space<vmem>>) attributes {dimension_semantics = [#tpu.dimension_semantics<parallel>, #tpu.dimension_semantics<parallel>, #tpu.dimension_semantics<arbitrary>], iteration_bounds = array<i64: 1, 1, 1>, scalar_prefetch = 0 : i64, scratch_operands = 1 : i64, tpu.core_type = #tpu.core_type<tc>, window_params = [{transform_indices = @transform_0, window_bounds = array<i64: 128, 128>}, {transform_indices = @transform_1, window_bounds = array<i64: 128, 128>}, {transform_indices = @transform_2, window_bounds = array<i64: 1, 128>}, {transform_indices = @transform_3, window_bounds = array<i64: 128, 128>}]} {
    %c0_i32 = arith.constant 0 : i32
    %0 = arith.cmpi eq, %arg2, %c0_i32 : i32
    %1 = arith.extui %0 : i1 to i32
    %c0_i32_0 = arith.constant 0 : i32
    %2 = arith.cmpi ne, %1, %c0_i32_0 : i32
    scf.if %2 {
      %cst_10 = arith.constant 0.000000e+00 : f32
      %12 = vector.broadcast %cst_10 : f32 to vector<128x128xf32>
      %c0_11 = arith.constant 0 : index
      %c0_12 = arith.constant 0 : index
      %13 = vector.load %arg7[%c0_11, %c0_12] : memref<128x128xf32, #tpu.memory_space<vmem>>, vector<128x128xf32>
      tpu.vector_store %arg7[%c0_11, %c0_12], %12 {strides = array<i32>} : memref<128x128xf32, #tpu.memory_space<vmem>>, vector<128x128xf32>,
    } else {
    }
    %c0 = arith.constant 0 : index
    %c0_1 = arith.constant 0 : index
    %3 = vector.load %arg7[%c0, %c0_1] : memref<128x128xf32, #tpu.memory_space<vmem>>, vector<128x128xf32>
    %c0_2 = arith.constant 0 : index
    %c0_3 = arith.constant 0 : index
    %4 = vector.load %arg3[%c0_2, %c0_3] : memref<128x128xbf16, #tpu.memory_space<vmem>>, vector<128x128xbf16>
    %c0_4 = arith.constant 0 : index
    %c0_5 = arith.constant 0 : index
    %5 = vector.load %arg4[%c0_4, %c0_5] : memref<128x128xbf16, #tpu.memory_space<vmem>>, vector<128x128xbf16>
    %cst = arith.constant dense<0.000000e+00> : vector<128x128xf32>
    %6 = tpu.matmul %4, %5, %cst {dimension_numbers = #tpu.dot_dimension_numbers<[1], [0], [0], [1], [0, 0, 1, 1], [], []>} : vector<128x128xbf16>, vector<128x128xbf16>, vector<128x128xf32> -> vector<128x128xf32>
    %7 = arith.addf %3, %6 : vector<128x128xf32>
    %c0_6 = arith.constant 0 : index
    %c0_7 = arith.constant 0 : index
    %8 = vector.load %arg7[%c0_6, %c0_7] : memref<128x128xf32, #tpu.memory_space<vmem>>, vector<128x128xf32>
    tpu.vector_store %arg7[%c0_6, %c0_7], %7 {strides = array<i32>} : memref<128x128xf32, #tpu.memory_space<vmem>>, vector<128x128xf32>,
    %c0_i32_8 = arith.constant 0 : i32
    %9 = arith.cmpi eq, %arg2, %c0_i32_8 : i32
    %10 = arith.extui %9 : i1 to i32
    %c0_i32_9 = arith.constant 0 : i32
    %11 = arith.cmpi ne, %10, %c0_i32_9 : i32
    scf.if %11 {
      %c0_10 = arith.constant 0 : index
      %c0_11 = arith.constant 0 : index
      %12 = vector.load %arg7[%c0_10, %c0_11] : memref<128x128xf32, #tpu.memory_space<vmem>>, vector<128x128xf32>
      %c0_12 = arith.constant 0 : index
      %c0_13 = arith.constant 0 : index
      %13 = vector.load %arg5[%c0_12, %c0_13] : memref<1x128xf32, #tpu.memory_space<vmem>>, vector<1x128xf32>
      %14 = vector.broadcast %13 : vector<1x128xf32> to vector<128x128xf32>
      %15 = arith.addf %12, %14 : vector<128x128xf32>
      %cst_14 = arith.constant 0.000000e+00 : f32
      %16 = vector.broadcast %cst_14 : f32 to vector<128x128xf32>
      %17 = arith.maximumf %15, %16 : vector<128x128xf32>
      %c0_15 = arith.constant 0 : index
      %c0_16 = arith.constant 0 : index
      %18 = vector.load %arg6[%c0_15, %c0_16] : memref<128x128xf32, #tpu.memory_space<vmem>>, vector<128x128xf32>
      tpu.vector_store %arg6[%c0_15, %c0_16], %17 {strides = array<i32>} : memref<128x128xf32, #tpu.memory_space<vmem>>, vector<128x128xf32>,
    } else {
    }
    return
  }
  func.func @transform_0(%arg0: i32, %arg1: i32, %arg2: i32) -> (i32, i32) {
    %c0_i32 = arith.constant 0 : i32
    return %arg0, %arg2 : i32, i32
  }
  func.func @transform_1(%arg0: i32, %arg1: i32, %arg2: i32) -> (i32, i32) {
    %c0_i32 = arith.constant 0 : i32
    return %arg2, %arg1 : i32, i32
  }
  func.func @transform_2(%arg0: i32, %arg1: i32, %arg2: i32) -> (i32, i32) {
    %c0_i32 = arith.constant 0 : i32
    %c0_i32_0 = arith.constant 0 : i32
    return %c0_i32, %arg1 : i32, i32
  }
  func.func @transform_3(%arg0: i32, %arg1: i32, %arg2: i32) -> (i32, i32) {
    %c0_i32 = arith.constant 0 : i32
    return %arg0, %arg1 : i32, i32
  }
}

module attributes {stable_mosaic.version = 11 : i64} {
  func.func @kernel(%arg0: i32, %arg1: i32, %arg2: i32, %arg3: memref<128x128xbf16, #tpu.memory_space<vmem>>, %arg4: memref<128x128xbf16, #tpu.memory_space<vmem>>, %arg5: memref<1x128xf32, #tpu.memory_space<vmem>>, %arg6: memref<128x128xbf16, #tpu.memory_space<vmem>>, %arg7: memref<128x128xbf16, #tpu.memory_space<vmem>>, %arg8: memref<128x128xf32, #tpu.memory_space<vmem>>, %arg9: memref<128x128xf32, #tpu.memory_space<vmem>>) attributes {dimension_semantics = [#tpu.dimension_semantics<parallel>, #tpu.dimension_semantics<parallel>, #tpu.dimension_semantics<arbitrary>], iteration_bounds = array<i64: 1, 1, 1>, scalar_prefetch = 0 : i64, scratch_operands = 1 : i64, tpu.core_type = #tpu.core_type<tc>, window_params = [{transform_indices = @transform_0, window_bounds = array<i64: 128, 128>}, {transform_indices = @transform_1, window_bounds = array<i64: 128, 128>}, {transform_indices = @transform_2, window_bounds = array<i64: 1, 128>}, {transform_indices = @transform_3, window_bounds = array<i64: 128, 128>}, {transform_indices = @transform_4, window_bounds = array<i64: 128, 128>}, {transform_indices = @transform_5, window_bounds = array<i64: 128, 128>}]} {
    %c0_i32 = arith.constant 0 : i32
    %0 = arith.cmpi eq, %arg2, %c0_i32 : i32
    %1 = arith.extui %0 : i1 to i32
    %c0_i32_0 = arith.constant 0 : i32
    %2 = arith.cmpi ne, %1, %c0_i32_0 : i32
    scf.if %2 {
      %cst_12 = arith.constant 0.000000e+00 : f32
      %15 = vector.broadcast %cst_12 : f32 to vector<128x128xf32>
      %c0_13 = arith.constant 0 : index
      %c0_14 = arith.constant 0 : index
      %16 = vector.load %arg9[%c0_13, %c0_14] : memref<128x128xf32, #tpu.memory_space<vmem>>, vector<128x128xf32>
      tpu.vector_store %arg9[%c0_13, %c0_14], %15 {strides = array<i32>} : memref<128x128xf32, #tpu.memory_space<vmem>>, vector<128x128xf32>,
    } else {
    }
    %c0 = arith.constant 0 : index
    %c0_1 = arith.constant 0 : index
    %3 = vector.load %arg9[%c0, %c0_1] : memref<128x128xf32, #tpu.memory_space<vmem>>, vector<128x128xf32>
    %c0_2 = arith.constant 0 : index
    %c0_3 = arith.constant 0 : index
    %4 = vector.load %arg3[%c0_2, %c0_3] : memref<128x128xbf16, #tpu.memory_space<vmem>>, vector<128x128xbf16>
    %c0_4 = arith.constant 0 : index
    %c0_5 = arith.constant 0 : index
    %5 = vector.load %arg4[%c0_4, %c0_5] : memref<128x128xbf16, #tpu.memory_space<vmem>>, vector<128x128xbf16>
    %cst = arith.constant dense<0.000000e+00> : vector<128x128xf32>
    %6 = tpu.matmul %4, %5, %cst {dimension_numbers = #tpu.dot_dimension_numbers<[1], [0], [0], [1], [0, 0, 1, 1], [], []>} : vector<128x128xbf16>, vector<128x128xbf16>, vector<128x128xf32> -> vector<128x128xf32>
    %7 = arith.addf %3, %6 : vector<128x128xf32>
    %c0_6 = arith.constant 0 : index
    %c0_7 = arith.constant 0 : index
    %8 = vector.load %arg9[%c0_6, %c0_7] : memref<128x128xf32, #tpu.memory_space<vmem>>, vector<128x128xf32>
    tpu.vector_store %arg9[%c0_6, %c0_7], %7 {strides = array<i32>} : memref<128x128xf32, #tpu.memory_space<vmem>>, vector<128x128xf32>,
    %c0_i32_8 = arith.constant 0 : i32
    %9 = arith.cmpi eq, %arg2, %c0_i32_8 : i32
    %10 = arith.extui %9 : i1 to i32
    %c0_i32_9 = arith.constant 0 : i32
    %11 = arith.cmpi ne, %10, %c0_i32_9 : i32
    scf.if %11 {
      %c0_12 = arith.constant 0 : index
      %c0_13 = arith.constant 0 : index
      %15 = vector.load %arg9[%c0_12, %c0_13] : memref<128x128xf32, #tpu.memory_space<vmem>>, vector<128x128xf32>
      %c0_14 = arith.constant 0 : index
      %c0_15 = arith.constant 0 : index
      %16 = vector.load %arg6[%c0_14, %c0_15] : memref<128x128xbf16, #tpu.memory_space<vmem>>, vector<128x128xbf16>
      %c0_16 = arith.constant 0 : index
      %c0_17 = arith.constant 0 : index
      %17 = vector.load %arg7[%c0_16, %c0_17] : memref<128x128xbf16, #tpu.memory_space<vmem>>, vector<128x128xbf16>
      %cst_18 = arith.constant dense<0.000000e+00> : vector<128x128xf32>
      %18 = tpu.matmul %16, %17, %cst_18 {dimension_numbers = #tpu.dot_dimension_numbers<[1], [0], [0], [1], [0, 0, 1, 1], [], []>} : vector<128x128xbf16>, vector<128x128xbf16>, vector<128x128xf32> -> vector<128x128xf32>
      %19 = arith.addf %15, %18 : vector<128x128xf32>
      %c0_19 = arith.constant 0 : index
      %c0_20 = arith.constant 0 : index
      %20 = vector.load %arg9[%c0_19, %c0_20] : memref<128x128xf32, #tpu.memory_space<vmem>>, vector<128x128xf32>
      tpu.vector_store %arg9[%c0_19, %c0_20], %19 {strides = array<i32>} : memref<128x128xf32, #tpu.memory_space<vmem>>, vector<128x128xf32>,
    } else {
    }
    %c0_i32_10 = arith.constant 0 : i32
    %12 = arith.cmpi eq, %arg2, %c0_i32_10 : i32
    %13 = arith.extui %12 : i1 to i32
    %c0_i32_11 = arith.constant 0 : i32
    %14 = arith.cmpi ne, %13, %c0_i32_11 : i32
    scf.if %14 {
      %c0_12 = arith.constant 0 : index
      %c0_13 = arith.constant 0 : index
      %15 = vector.load %arg9[%c0_12, %c0_13] : memref<128x128xf32, #tpu.memory_space<vmem>>, vector<128x128xf32>
      %c0_14 = arith.constant 0 : index
      %c0_15 = arith.constant 0 : index
      %16 = vector.load %arg5[%c0_14, %c0_15] : memref<1x128xf32, #tpu.memory_space<vmem>>, vector<1x128xf32>
      %17 = vector.broadcast %16 : vector<1x128xf32> to vector<128x128xf32>
      %18 = arith.addf %15, %17 : vector<128x128xf32>
      %cst_16 = arith.constant 0.000000e+00 : f32
      %19 = vector.broadcast %cst_16 : f32 to vector<128x128xf32>
      %20 = arith.maximumf %18, %19 : vector<128x128xf32>
      %c0_17 = arith.constant 0 : index
      %c0_18 = arith.constant 0 : index
      %21 = vector.load %arg8[%c0_17, %c0_18] : memref<128x128xf32, #tpu.memory_space<vmem>>, vector<128x128xf32>
      tpu.vector_store %arg8[%c0_17, %c0_18], %20 {strides = array<i32>} : memref<128x128xf32, #tpu.memory_space<vmem>>, vector<128x128xf32>,
    } else {
    }
    return
  }
  func.func @transform_0(%arg0: i32, %arg1: i32, %arg2: i32) -> (i32, i32) {
    %c0_i32 = arith.constant 0 : i32
    return %arg0, %arg2 : i32, i32
  }
  func.func @transform_1(%arg0: i32, %arg1: i32, %arg2: i32) -> (i32, i32) {
    %c0_i32 = arith.constant 0 : i32
    return %arg2, %arg1 : i32, i32
  }
  func.func @transform_2(%arg0: i32, %arg1: i32, %arg2: i32) -> (i32, i32) {
    %c0_i32 = arith.constant 0 : i32
    %c0_i32_0 = arith.constant 0 : i32
    return %c0_i32, %arg1 : i32, i32
  }
  func.func @transform_3(%arg0: i32, %arg1: i32, %arg2: i32) -> (i32, i32) {
    %c0_i32 = arith.constant 0 : i32
    %c0_i32_0 = arith.constant 0 : i32
    return %arg0, %c0_i32 : i32, i32
  }
  func.func @transform_4(%arg0: i32, %arg1: i32, %arg2: i32) -> (i32, i32) {
    %c0_i32 = arith.constant 0 : i32
    %c0_i32_0 = arith.constant 0 : i32
    return %c0_i32, %arg1 : i32, i32
  }
  func.func @transform_5(%arg0: i32, %arg1: i32, %arg2: i32) -> (i32, i32) {
    %c0_i32 = arith.constant 0 : i32
    return %arg0, %arg1 : i32, i32
  }
}

</mosaic_0001>

<bundles_post_ra>
// kernel: _lambda_.2
= control target key start
LH: loop header
LB: loop body
LE: loop exit
PB: predicated region body
PF: predicated region fallthrough
CT: control target
= control target key end

     0   :  { %s602_s1 = inlined_call_operand.vmem [shape: bf16[128,128], index: 1, kind: input, shape index: {}]   ;;  %s603_s0 = inlined_call_operand.vmem [shape: bf16[128,128], index: 0, kind: input, shape index: {}]   ;;  %s604_s2 = inlined_call_operand.vmem [shape: f32[1,128], index: 2, kind: input, shape index: {}]   ;;  %s605_s3 = inlined_call_operand.vmem [shape: f32[128,128], index: 3, kind: output, shape index: {}]  }
   0x1   :  { %v467_v0 = vld [vmem:[%s602_s1] sm:$0xff]   ;;  %v468_v1 = vld [vmem:[%s602_s1 + $0x8] sm:$0xff]   ;;  %v469_v2 = vld [vmem:[%s602_s1 + $0x10] sm:$0xff]  }
   0x2   :  { %419 = vmatprep.subr.bf16.mxu0 %v467_v0  ;;  %451 = vmatprep.subr.bf16.mxu1 %v467_v0  ;;  %v470_v3 = vld [vmem:[%s602_s1 + $0x18] sm:$0xff]   ;;  %v475_v4 = vld [vmem:[%s603_s0] sm:$0xff]   ;;  %v472_v7 = vld [vmem:[%s602_s1 + $0x28] sm:$0xff]  }
   0x3   :  { %420 = vmatpush3.bf16.msra.mxu0 %v467_v0  ;;  %459 = vmatpush3.bf16.msra.mxu1 %v467_v0  ;;  %v476_v5 = vld [vmem:[%s603_s0 + $0x20] sm:$0xff]   ;;  %v473_v8 = vld [vmem:[%s602_s1 + $0x30] sm:$0xff]   ;;  %v474_v9 = vld [vmem:[%s602_s1 + $0x38] sm:$0xff]  }
   0x4   :  { %421 = vmatprep.subr.bf16.mxu0 %v468_v1  ;;  %452 = vmatprep.subr.bf16.mxu1 %v468_v1  ;;  %v471_v6 = vld [vmem:[%s602_s1 + $0x20] sm:$0xff]   ;;  %v477_v10 = vld [vmem:[%s603_s0 + $0x8] sm:$0xff]   ;;  %v479_v12 = vld [vmem:[%s603_s0 + $0x10] sm:$0xff]  }
   0x5   :  { %435 = vmatprep.mubr.bf16.mxu0 %v475_v4  ;;  %443 = vmatprep.mubr.bf16.mxu1 %v476_v5  ;;  %v478_v11 = vld [vmem:[%s603_s0 + $0x28] sm:$0xff]   ;;  %v480_v13 = vld [vmem:[%s603_s0 + $0x30] sm:$0xff]   ;;  %v481_v14 = vld [vmem:[%s603_s0 + $0x18] sm:$0xff]  }
   0x6   :  { %v482_v15 = vld [vmem:[%s603_s0 + $0x38] sm:$0xff]   ;;  %v402_v16 = vld [vmem:[%s604_s2] ss:$0 sm:$0xff] }
   0x7   :  { %422 = vmatpush3.bf16.msra.mxu0 %v468_v1  ;;  %460 = vmatpush3.bf16.msra.mxu1 %v468_v1 }
   0x8   :  { %423 = vmatprep.subr.bf16.mxu0 %v469_v2  ;;  %453 = vmatprep.subr.bf16.mxu1 %v469_v2 }
   0xb   :  { %424 = vmatpush3.bf16.msra.mxu0 %v469_v2  ;;  %461 = vmatpush3.bf16.msra.mxu1 %v469_v2 }
   0xc   :  { %425 = vmatprep.subr.bf16.mxu0 %v470_v3  ;;  %454 = vmatprep.subr.bf16.mxu1 %v470_v3 }
   0xf   :  { %426 = vmatpush3.bf16.msra.mxu0 %v470_v3  ;;  %462 = vmatpush3.bf16.msra.mxu1 %v470_v3 }
  0x10   :  { %427 = vmatprep.subr.bf16.mxu0 %v471_v6  ;;  %455 = vmatprep.subr.bf16.mxu1 %v471_v6 }
  0x13   :  { %428 = vmatpush3.bf16.msra.mxu0 %v471_v6  ;;  %463 = vmatpush3.bf16.msra.mxu1 %v471_v6 }
  0x14   :  { %429 = vmatprep.subr.bf16.mxu0 %v472_v7  ;;  %456 = vmatprep.subr.bf16.mxu1 %v472_v7 }
  0x17   :  { %430 = vmatpush3.bf16.msra.mxu0 %v472_v7  ;;  %464 = vmatpush3.bf16.msra.mxu1 %v472_v7 }
  0x18   :  { %431 = vmatprep.subr.bf16.mxu0 %v473_v8  ;;  %457 = vmatprep.subr.bf16.mxu1 %v473_v8 }
  0x1b   :  { %432 = vmatpush3.bf16.msra.mxu0 %v473_v8  ;;  %465 = vmatpush3.bf16.msra.mxu1 %v473_v8 }
  0x1c   :  { %433 = vmatprep.subr.bf16.mxu0 %v474_v9  ;;  %458 = vmatprep.subr.bf16.mxu1 %v474_v9 }
  0x1f   :  { %434 = vmatpush3.bf16.msra.mxu0 %v474_v9  ;;  %466 = vmatpush3.bf16.msra.mxu1 %v474_v9 }
  0x22   :  { %436 = vmatmul.mubr.bf16.vlgmr.msra.gmra.mrb[0].mxu0 %v477_v10  ;;  %444 = vmatmul.mubr.bf16.vlgmr.msra.gmra.mrb[0].mxu1 %v478_v11 }
  0x23   :  { %439 = vmatprep.mubr.bf16.mxu0 %v479_v12  ;;  %447 = vmatprep.mubr.bf16.mxu1 %v480_v13 }
  0x2a   :  { %440 = vmatmul.mubr.bf16.gmra.mrb[4].mxu0 %v481_v14  ;;  %448 = vmatmul.mubr.bf16.gmra.mrb[4].mxu1 %v482_v15 }
  0xf5   :  { %v437_v17 = vpop.f32.mrb[0].mxu0  ;;  %v445_v18 = vpop.f32.mrb[0].mxu1 }
  0xf6   :  { %v336_v19 = vadd.f32 %v437_v17, %v402_v16  ;;  %v344_v20 = vadd.f32 %v445_v18, %v402_v16  ;;  %v213_v21 = vpop.f32.mrb[1].mxu0  ;;  %v245_v22 = vpop.f32.mrb[1].mxu1 }
  0xf7   :  { %v334_v23 = vadd.f32 %v402_v16, %v213_v21  ;;  %v342_v24 = vadd.f32 %v402_v16, %v245_v22  ;;  %v438_v25 = vpop.f32.mrb[2].mxu0  ;;  %v446_v26 = vpop.f32.mrb[2].mxu1 }
  0xf8   :  { %v352_v27 = vmax.f32 %v336_v19, 0.0  ;;  %v360_v28 = vmax.f32 %v344_v20, 0.0  ;;  %v337_v29 = vadd.f32 %v438_v25, %v402_v16  ;;  %v345_v30 = vadd.f32 %v446_v26, %v402_v16  ;;  %v216_v31 = vpop.f32.mrb[3].mxu0  ;;  %v248_v32 = vpop.f32.mrb[3].mxu1 }
  0xf9   :  { %v350_v33 = vmax.f32 %v334_v23, 0.0  ;;  %v358_v34 = vmax.f32 %v342_v24, 0.0  ;;  %v335_v35 = vadd.f32 %v402_v16, %v216_v31  ;;  %v343_v36 = vadd.f32 %v402_v16, %v248_v32 }
  0xfa   :  { %368 = vst [vmem:[%s605_s3 + $0x10] sm:$0xff] %v352_v27  ;;  %376 = vst [vmem:[%s605_s3 + $0x50] sm:$0xff] %v360_v28  ;;  %v353_v37 = vmax.f32 %v337_v29, 0.0  ;;  %v361_v38 = vmax.f32 %v345_v30, 0.0 }
  0xfb   :  { %366 = vst [vmem:[%s605_s3] sm:$0xff] %v350_v33  ;;  %374 = vst [vmem:[%s605_s3 + $0x40] sm:$0xff] %v358_v34  ;;  %v351_v39 = vmax.f32 %v335_v35, 0.0  ;;  %v359_v40 = vmax.f32 %v343_v36, 0.0 }
  0xfc   :  { %369 = vst [vmem:[%s605_s3 + $0x18] sm:$0xff] %v353_v37  ;;  %377 = vst [vmem:[%s605_s3 + $0x58] sm:$0xff] %v361_v38 }
  0xfd   :  { %367 = vst [vmem:[%s605_s3 + $0x8] sm:$0xff] %v351_v39  ;;  %375 = vst [vmem:[%s605_s3 + $0x48] sm:$0xff] %v359_v40  ;;  %v441_v41 = vpop.f32.mrb[4].mxu0  ;;  %v449_v42 = vpop.f32.mrb[4].mxu1 }
  0xfe   :  { %v340_v43 = vadd.f32 %v441_v41, %v402_v16  ;;  %v348_v44 = vadd.f32 %v449_v42, %v402_v16  ;;  %v229_v45 = vpop.f32.mrb[5].mxu0  ;;  %v261_v46 = vpop.f32.mrb[5].mxu1 }
  0xff   :  { %v338_v47 = vadd.f32 %v402_v16, %v229_v45  ;;  %v346_v48 = vadd.f32 %v402_v16, %v261_v46  ;;  %v442_v49 = vpop.f32.mrb[6].mxu0  ;;  %v450_v50 = vpop.f32.mrb[6].mxu1 }
 0x100   :  { %v356_v51 = vmax.f32 %v340_v43, 0.0  ;;  %v364_v52 = vmax.f32 %v348_v44, 0.0  ;;  %v341_v53 = vadd.f32 %v442_v49, %v402_v16  ;;  %v349_v54 = vadd.f32 %v450_v50, %v402_v16  ;;  %v232_v55 = vpop.f32.mrb[7].mxu0  ;;  %v264_v56 = vpop.f32.mrb[7].mxu1 }
 0x101   :  { %v354_v57 = vmax.f32 %v338_v47, 0.0  ;;  %v362_v58 = vmax.f32 %v346_v48, 0.0  ;;  %v339_v59 = vadd.f32 %v402_v16, %v232_v55  ;;  %v347_v60 = vadd.f32 %v402_v16, %v264_v56 }
 0x102   :  { %372 = vst [vmem:[%s605_s3 + $0x30] sm:$0xff] %v356_v51  ;;  %380 = vst [vmem:[%s605_s3 + $0x70] sm:$0xff] %v364_v52  ;;  %v357_v61 = vmax.f32 %v341_v53, 0.0  ;;  %v365_v62 = vmax.f32 %v349_v54, 0.0 }
 0x103   :  { %370 = vst [vmem:[%s605_s3 + $0x20] sm:$0xff] %v354_v57  ;;  %378 = vst [vmem:[%s605_s3 + $0x60] sm:$0xff] %v362_v58  ;;  %v355_v63 = vmax.f32 %v339_v59, 0.0  ;;  %v363_v0 = vmax.f32 %v347_v60, 0.0 }
 0x104   :  { %373 = vst [vmem:[%s605_s3 + $0x38] sm:$0xff] %v357_v61  ;;  %381 = vst [vmem:[%s605_s3 + $0x78] sm:$0xff] %v365_v62 }
 0x105   :  { %371 = vst [vmem:[%s605_s3 + $0x28] sm:$0xff] %v355_v63  ;;  %379 = vst [vmem:[%s605_s3 + $0x68] sm:$0xff] %v363_v0 }

// kernel: _lambda_.3
= control target key start
LH: loop header
LB: loop body
LE: loop exit
PB: predicated region body
PF: predicated region fallthrough
CT: control target
= control target key end

     0   :  { %s1037_s1 = inlined_call_operand.vmem [shape: bf16[128,128], index: 1, kind: input, shape index: {}]   ;;  %s1038_s4 = inlined_call_operand.vmem [shape: bf16[128,128], index: 4, kind: input, shape index: {}]   ;;  %s1039_s0 = inlined_call_operand.vmem [shape: bf16[128,128], index: 0, kind: input, shape index: {}]   ;;  %s1040_s3 = inlined_call_operand.vmem [shape: bf16[128,128], index: 3, kind: input, shape index: {}]   ;;  %s1041_s2 = inlined_call_operand.vmem [shape: f32[1,128], index: 2, kind: input, shape index: {}]   ;;  %s1042_s5 = inlined_call_operand.vmem [shape: f32[128,128], index: 5, kind: output, shape index: {}]  }
   0x1   :  { %v810_v0 = vld [vmem:[%s1037_s1] sm:$0xff]   ;;  %v812_v2 = vld [vmem:[%s1037_s1 + $0x8] sm:$0xff]   ;;  %v814_v4 = vld [vmem:[%s1037_s1 + $0x10] sm:$0xff]  }
   0x2   :  { %v811_v1 = vld [vmem:[%s1038_s4] sm:$0xff]   ;;  %730 = vmatprep.subr.bf16.mxu1 %v810_v0  ;;  %v813_v3 = vld [vmem:[%s1038_s4 + $0x8] sm:$0xff]   ;;  %v815_v5 = vld [vmem:[%s1038_s4 + $0x10] sm:$0xff]  }
   0x3   :  { %762 = vmatprep.subr.bf16.mxu0 %v811_v1  ;;  %731 = vmatpush3.bf16.msra.mxu1 %v810_v0  ;;  %v816_v6 = vld [vmem:[%s1037_s1 + $0x18] sm:$0xff]   ;;  %v818_v8 = vld [vmem:[%s1037_s1 + $0x20] sm:$0xff]   ;;  %v820_v10 = vld [vmem:[%s1037_s1 + $0x28] sm:$0xff]  }
   0x4   :  { %763 = vmatpush3.bf16.msra.mxu0 %v811_v1  ;;  %732 = vmatprep.subr.bf16.mxu1 %v812_v2  ;;  %v817_v7 = vld [vmem:[%s1038_s4 + $0x18] sm:$0xff]   ;;  %v819_v9 = vld [vmem:[%s1038_s4 + $0x20] sm:$0xff]   ;;  %v821_v11 = vld [vmem:[%s1038_s4 + $0x28] sm:$0xff]  }
   0x5   :  { %764 = vmatprep.subr.bf16.mxu0 %v813_v3  ;;  %v826_v12 = vld [vmem:[%s1039_s0] sm:$0xff]   ;;  %v822_v14 = vld [vmem:[%s1037_s1 + $0x30] sm:$0xff]   ;;  %v824_v16 = vld [vmem:[%s1037_s1 + $0x38] sm:$0xff]  }
   0x6   :  { %v827_v13 = vld [vmem:[%s1040_s3] sm:$0xff]   ;;  %746 = vmatprep.mubr.bf16.mxu1 %v826_v12  ;;  %v823_v15 = vld [vmem:[%s1038_s4 + $0x30] sm:$0xff]   ;;  %v825_v17 = vld [vmem:[%s1038_s4 + $0x38] sm:$0xff]  }
   0x7   :  { %733 = vmatpush3.bf16.msra.mxu1 %v812_v2  ;;  %778 = vmatprep.mubr.bf16.mxu0 %v827_v13  ;;  %v828_v18 = vld [vmem:[%s1039_s0 + $0x8] sm:$0xff]   ;;  %v830_v20 = vld [vmem:[%s1039_s0 + $0x10] sm:$0xff]   ;;  %v832_v22 = vld [vmem:[%s1039_s0 + $0x18] sm:$0xff]  }
   0x8   :  { %765 = vmatpush3.bf16.msra.mxu0 %v813_v3  ;;  %734 = vmatprep.subr.bf16.mxu1 %v814_v4  ;;  %v829_v19 = vld [vmem:[%s1040_s3 + $0x8] sm:$0xff]   ;;  %v831_v21 = vld [vmem:[%s1040_s3 + $0x10] sm:$0xff]   ;;  %v833_v23 = vld [vmem:[%s1040_s3 + $0x18] sm:$0xff]  }
   0x9   :  { %766 = vmatprep.subr.bf16.mxu0 %v815_v5  ;;  %v834_v24 = vld [vmem:[%s1039_s0 + $0x20] sm:$0xff]   ;;  %v836_v26 = vld [vmem:[%s1039_s0 + $0x28] sm:$0xff]   ;;  %v838_v28 = vld [vmem:[%s1039_s0 + $0x30] sm:$0xff]  }
   0xa   :  { %v835_v25 = vld [vmem:[%s1040_s3 + $0x20] sm:$0xff]   ;;  %v837_v27 = vld [vmem:[%s1040_s3 + $0x28] sm:$0xff]   ;;  %v839_v29 = vld [vmem:[%s1040_s3 + $0x30] sm:$0xff]  }
   0xb   :  { %735 = vmatpush3.bf16.msra.mxu1 %v814_v4  ;;  %v840_v30 = vld [vmem:[%s1039_s0 + $0x38] sm:$0xff]   ;;  %v971_v34 = vld [vmem:[%s1041_s2] ss:$0 sm:$0xff] }
   0xc   :  { %767 = vmatpush3.bf16.msra.mxu0 %v815_v5  ;;  %736 = vmatprep.subr.bf16.mxu1 %v816_v6  ;;  %v841_v31 = vld [vmem:[%s1040_s3 + $0x38] sm:$0xff]  }
   0xd   :  { %768 = vmatprep.subr.bf16.mxu0 %v817_v7 }
   0xf   :  { %737 = vmatpush3.bf16.msra.mxu1 %v816_v6 }
  0x10   :  { %769 = vmatpush3.bf16.msra.mxu0 %v817_v7  ;;  %738 = vmatprep.subr.bf16.mxu1 %v818_v8 }
  0x11   :  { %770 = vmatprep.subr.bf16.mxu0 %v819_v9 }
  0x13   :  { %739 = vmatpush3.bf16.msra.mxu1 %v818_v8 }
  0x14   :  { %771 = vmatpush3.bf16.msra.mxu0 %v819_v9  ;;  %740 = vmatprep.subr.bf16.mxu1 %v820_v10 }
  0x15   :  { %772 = vmatprep.subr.bf16.mxu0 %v821_v11 }
  0x17   :  { %741 = vmatpush3.bf16.msra.mxu1 %v820_v10 }
  0x18   :  { %773 = vmatpush3.bf16.msra.mxu0 %v821_v11  ;;  %742 = vmatprep.subr.bf16.mxu1 %v822_v14 }
  0x19   :  { %774 = vmatprep.subr.bf16.mxu0 %v823_v15 }
  0x1b   :  { %743 = vmatpush3.bf16.msra.mxu1 %v822_v14 }
  0x1c   :  { %775 = vmatpush3.bf16.msra.mxu0 %v823_v15  ;;  %744 = vmatprep.subr.bf16.mxu1 %v824_v16 }
  0x1d   :  { %776 = vmatprep.subr.bf16.mxu0 %v825_v17 }
  0x1f   :  { %745 = vmatpush3.bf16.msra.mxu1 %v824_v16 }
  0x20   :  { %777 = vmatpush3.bf16.msra.mxu0 %v825_v17 }
  0x22   :  { %747 = vmatmul.mubr.bf16.vlgmr.msra.gmra.mrb[0].mxu1 %v828_v18 }
  0x23   :  { %779 = vmatmul.mubr.bf16.vlgmr.msra.gmra.mrb[0].mxu0 %v829_v19  ;;  %750 = vmatprep.mubr.bf16.mxu1 %v830_v20 }
  0x24   :  { %782 = vmatprep.mubr.bf16.mxu0 %v831_v21 }
  0x2a   :  { %751 = vmatmul.mubr.bf16.gmra.mrb[4].mxu1 %v832_v22 }
  0x2b   :  { %783 = vmatmul.mubr.bf16.gmra.mrb[4].mxu0 %v833_v23  ;;  %754 = vmatprep.mubr.bf16.mxu1 %v834_v24 }
  0x2c   :  { %786 = vmatprep.mubr.bf16.mxu0 %v835_v25 }
  0x32   :  { %755 = vmatmul.mubr.bf16.gmra.mrb[8].mxu1 %v836_v26 }
  0x33   :  { %787 = vmatmul.mubr.bf16.gmra.mrb[8].mxu0 %v837_v27  ;;  %758 = vmatprep.mubr.bf16.mxu1 %v838_v28 }
  0x34   :  { %790 = vmatprep.mubr.bf16.mxu0 %v839_v29 }
  0x3a   :  { %759 = vmatmul.mubr.bf16.gmra.mrb[12].mxu1 %v840_v30 }
  0x3b   :  { %791 = vmatmul.mubr.bf16.gmra.mrb[12].mxu0 %v841_v31 }
  0xf5   :  { %v748_v32 = vpop.f32.mrb[0].mxu1 }
  0xf6   :  { %v780_v33 = vpop.f32.mrb[0].mxu0  ;;  %v219_v35 = vpop.f32.mrb[1].mxu1 }
  0xf7   :  { %v560_v36 = vadd.f32 %v780_v33, %v748_v32  ;;  %v495_v37 = vpop.f32.mrb[1].mxu0  ;;  %v749_v38 = vpop.f32.mrb[2].mxu1 }
  0xf8   :  { %v558_v39 = vadd.f32 %v495_v37, %v219_v35  ;;  %v781_v40 = vpop.f32.mrb[2].mxu0  ;;  %v222_v41 = vpop.f32.mrb[3].mxu1 }
  0xf9   :  { %v615_v42 = vadd.f32 %v971_v34, %v560_v36  ;;  %v561_v43 = vadd.f32 %v781_v40, %v749_v38  ;;  %v498_v44 = vpop.f32.mrb[3].mxu0 }
  0xfa   :  { %v613_v45 = vadd.f32 %v971_v34, %v558_v39  ;;  %v559_v46 = vadd.f32 %v498_v44, %v222_v41 }
  0xfb   :  { %v631_v47 = vmax.f32 %v615_v42, 0.0  ;;  %v616_v48 = vadd.f32 %v971_v34, %v561_v43 }
  0xfc   :  { %v629_v49 = vmax.f32 %v613_v45, 0.0  ;;  %v614_v50 = vadd.f32 %v971_v34, %v559_v46 }
  0xfd   :  { %647 = vst [vmem:[%s1042_s5 + $0x10] sm:$0xff] %v631_v47  ;;  %v632_v51 = vmax.f32 %v616_v48, 0.0  ;;  %v752_v52 = vpop.f32.mrb[4].mxu1 }
  0xfe   :  { %645 = vst [vmem:[%s1042_s5] sm:$0xff] %v629_v49  ;;  %v630_v53 = vmax.f32 %v614_v50, 0.0  ;;  %v784_v54 = vpop.f32.mrb[4].mxu0  ;;  %v235_v55 = vpop.f32.mrb[5].mxu1 }
  0xff   :  { %648 = vst [vmem:[%s1042_s5 + $0x18] sm:$0xff] %v632_v51  ;;  %v564_v56 = vadd.f32 %v784_v54, %v752_v52  ;;  %v511_v57 = vpop.f32.mrb[5].mxu0  ;;  %v753_v58 = vpop.f32.mrb[6].mxu1 }
 0x100   :  { %646 = vst [vmem:[%s1042_s5 + $0x8] sm:$0xff] %v630_v53  ;;  %v562_v59 = vadd.f32 %v511_v57, %v235_v55  ;;  %v785_v60 = vpop.f32.mrb[6].mxu0  ;;  %v238_v61 = vpop.f32.mrb[7].mxu1 }
 0x101   :  { %v619_v62 = vadd.f32 %v971_v34, %v564_v56  ;;  %v565_v63 = vadd.f32 %v785_v60, %v753_v58  ;;  %v514_v0 = vpop.f32.mrb[7].mxu0 }
 0x102   :  { %v617_v1 = vadd.f32 %v971_v34, %v562_v59  ;;  %v563_v2 = vadd.f32 %v514_v0, %v238_v61 }
 0x103   :  { %v635_v3 = vmax.f32 %v619_v62, 0.0  ;;  %v620_v4 = vadd.f32 %v971_v34, %v565_v63 }
 0x104   :  { %v633_v5 = vmax.f32 %v617_v1, 0.0  ;;  %v618_v6 = vadd.f32 %v971_v34, %v563_v2 }
 0x105   :  { %651 = vst [vmem:[%s1042_s5 + $0x30] sm:$0xff] %v635_v3  ;;  %v636_v7 = vmax.f32 %v620_v4, 0.0  ;;  %v756_v8 = vpop.f32.mrb[8].mxu1 }
 0x106   :  { %649 = vst [vmem:[%s1042_s5 + $0x20] sm:$0xff] %v633_v5  ;;  %v634_v9 = vmax.f32 %v618_v6, 0.0  ;;  %v788_v10 = vpop.f32.mrb[8].mxu0  ;;  %v251_v11 = vpop.f32.mrb[9].mxu1 }
 0x107   :  { %652 = vst [vmem:[%s1042_s5 + $0x38] sm:$0xff] %v636_v7  ;;  %v568_v12 = vadd.f32 %v788_v10, %v756_v8  ;;  %v527_v13 = vpop.f32.mrb[9].mxu0  ;;  %v757_v14 = vpop.f32.mrb[10].mxu1 }
 0x108   :  { %650 = vst [vmem:[%s1042_s5 + $0x28] sm:$0xff] %v634_v9  ;;  %v566_v15 = vadd.f32 %v527_v13, %v251_v11  ;;  %v789_v16 = vpop.f32.mrb[10].mxu0  ;;  %v254_v17 = vpop.f32.mrb[11].mxu1 }
 0x109   :  { %v623_v18 = vadd.f32 %v971_v34, %v568_v12  ;;  %v569_v19 = vadd.f32 %v789_v16, %v757_v14  ;;  %v530_v20 = vpop.f32.mrb[11].mxu0 }
 0x10a   :  { %v621_v21 = vadd.f32 %v971_v34, %v566_v15  ;;  %v567_v22 = vadd.f32 %v530_v20, %v254_v17 }
 0x10b   :  { %v639_v23 = vmax.f32 %v623_v18, 0.0  ;;  %v624_v24 = vadd.f32 %v971_v34, %v569_v19 }
 0x10c   :  { %v637_v25 = vmax.f32 %v621_v21, 0.0  ;;  %v622_v26 = vadd.f32 %v971_v34, %v567_v22 }
 0x10d   :  { %655 = vst [vmem:[%s1042_s5 + $0x50] sm:$0xff] %v639_v23  ;;  %v640_v27 = vmax.f32 %v624_v24, 0.0  ;;  %v760_v28 = vpop.f32.mrb[12].mxu1 }
 0x10e   :  { %653 = vst [vmem:[%s1042_s5 + $0x40] sm:$0xff] %v637_v25  ;;  %v638_v29 = vmax.f32 %v622_v26, 0.0  ;;  %v792_v30 = vpop.f32.mrb[12].mxu0  ;;  %v267_v31 = vpop.f32.mrb[13].mxu1 }
 0x10f   :  { %656 = vst [vmem:[%s1042_s5 + $0x58] sm:$0xff] %v640_v27  ;;  %v572_v32 = vadd.f32 %v792_v30, %v760_v28  ;;  %v543_v33 = vpop.f32.mrb[13].mxu0  ;;  %v761_v35 = vpop.f32.mrb[14].mxu1 }
 0x110   :  { %654 = vst [vmem:[%s1042_s5 + $0x48] sm:$0xff] %v638_v29  ;;  %v570_v36 = vadd.f32 %v543_v33, %v267_v31  ;;  %v793_v37 = vpop.f32.mrb[14].mxu0  ;;  %v270_v38 = vpop.f32.mrb[15].mxu1 }
 0x111   :  { %v627_v39 = vadd.f32 %v971_v34, %v572_v32  ;;  %v573_v40 = vadd.f32 %v793_v37, %v761_v35  ;;  %v546_v41 = vpop.f32.mrb[15].mxu0 }
 0x112   :  { %v625_v42 = vadd.f32 %v971_v34, %v570_v36  ;;  %v571_v43 = vadd.f32 %v546_v41, %v270_v38 }
 0x113   :  { %v643_v44 = vmax.f32 %v627_v39, 0.0  ;;  %v628_v45 = vadd.f32 %v971_v34, %v573_v40 }
 0x114   :  { %v641_v46 = vmax.f32 %v625_v42, 0.0  ;;  %v626_v47 = vadd.f32 %v971_v34, %v571_v43 }
 0x115   :  { %659 = vst [vmem:[%s1042_s5 + $0x70] sm:$0xff] %v643_v44  ;;  %v644_v48 = vmax.f32 %v628_v45, 0.0 }
 0x116   :  { %657 = vst [vmem:[%s1042_s5 + $0x60] sm:$0xff] %v641_v46  ;;  %v642_v49 = vmax.f32 %v626_v47, 0.0 }
 0x117   :  { %660 = vst [vmem:[%s1042_s5 + $0x78] sm:$0xff] %v644_v48 }
 0x118   :  { %658 = vst [vmem:[%s1042_s5 + $0x68] sm:$0xff] %v642_v49 }

</bundles_post_ra>
